<compile_context>
chip_gen: v5e
topology: v5e:2x2
jax: 0.10.0
libtpu: 0.0.40
codegen_flags: <defaults>
</compile_context>

<pallas_src>
import functools

import jax
import jax.numpy as jnp
from jax.experimental import pallas as pl
from jax.experimental.pallas import tpu as pltpu


# --------------------------------------------------------------------------- #
# In-kernel helpers
# --------------------------------------------------------------------------- #
def _kl_rows(ys, yt):
    """Per-row KL(p_t || p_s) of temperature-scaled logits, log-domain form.

    Returns (kl_row (TB,1) f32, yt_max (TB,1) f32) -- yt_max is reused by the
    weighted branch's argmax.
    """
    ys_max = jnp.max(ys, axis=1, keepdims=True)
    yt_max = jnp.max(yt, axis=1, keepdims=True)
    ys_sh = ys - ys_max
    yt_sh = yt - yt_max
    es = jnp.exp(ys_sh)
    et = jnp.exp(yt_sh)
    denom_s = jnp.sum(es, axis=1, keepdims=True)                   # (TB, 1)
    denom_t = jnp.sum(et, axis=1, keepdims=True)                   # (TB, 1)
    num = jnp.sum(et * (yt_sh - ys_sh), axis=1, keepdims=True)     # (TB, 1)
    kl_row = num / denom_t + (jnp.log(denom_s) - jnp.log(denom_t))
    return kl_row, yt_max


def _row_weights(yt, yt_max, cw):
    """w[b] = cw[first argmax_c yt[b, c]]   (torch.max first-index tie-break)."""
    C = yt.shape[1]
    col = jax.lax.broadcasted_iota(jnp.int32, yt.shape, 1)
    is_max = yt == yt_max
    first_idx = jnp.min(jnp.where(is_max, col, C), axis=1, keepdims=True)  # (TB,1)
    # cw is the resident (1, C) row; select the weight at first_idx per row.
    return jnp.sum(jnp.where(col == first_idx, cw, jnp.float32(0.0)),
                   axis=1, keepdims=True)                                   # (TB,1)


def _accumulate(acc_ref, kl_row, g, *, TB, B, need_mask):
    """acc += kl_row, zeroing rows past B. Masking only runs on padded tiles."""
    if not need_mask:
        acc_ref[...] += kl_row
        return

    is_padded = (g + 1) * TB > B

    @pl.when(is_padded)
    def _():
        row = jax.lax.broadcasted_iota(jnp.int32, kl_row.shape, 0)
        valid = (g * TB + row) < B
        acc_ref[...] += jnp.where(valid, kl_row, jnp.float32(0.0))

    @pl.when(jnp.logical_not(is_padded))
    def _():
        acc_ref[...] += kl_row


# --------------------------------------------------------------------------- #
# Kernels
# --------------------------------------------------------------------------- #
def _kd_kernel(ys_ref, yt_ref, o_ref, acc_ref, *, T, B, TB, need_mask):
    i = pl.program_id(1)
    g = pl.program_id(0) * pl.num_programs(1) + i          # global tile index

    @pl.when(i == 0)
    def _():
        acc_ref[...] = jnp.zeros_like(acc_ref)

    inv_T = jnp.float32(1.0 / T)
    ys = ys_ref[...].astype(jnp.float32) * inv_T
    yt = yt_ref[...].astype(jnp.float32) * inv_T

    kl_row, _ = _kl_rows(ys, yt)
    _accumulate(acc_ref, kl_row, g, TB=TB, B=B, need_mask=need_mask)

    @pl.when(i == pl.num_programs(1) - 1)
    def _():
        o_ref[0, 0] = jnp.sum(acc_ref[...]) * jnp.float32(T * T / float(B))


def _kd_weighted_kernel(ys_ref, yt_ref, cw_ref, o_ref, acc_ref,
                        *, T, B, TB, need_mask):
    i = pl.program_id(1)
    g = pl.program_id(0) * pl.num_programs(1) + i

    @pl.when(i == 0)
    def _():
        acc_ref[...] = jnp.zeros_like(acc_ref)

    inv_T = jnp.float32(1.0 / T)
    ys = ys_ref[...].astype(jnp.float32) * inv_T
    yt = yt_ref[...].astype(jnp.float32) * inv_T

    kl_row, yt_max = _kl_rows(ys, yt)

    # argmax of the teacher logits (scale-invariant for T > 0; reuses yt_max).
    cw = cw_ref[...].astype(jnp.float32)                    # (1, C) resident
    w = _row_weights(yt, yt_max, cw)                        # (TB, 1)
    kl_row = kl_row * w

    _accumulate(acc_ref, kl_row, g, TB=TB, B=B, need_mask=need_mask)

    @pl.when(i == pl.num_programs(1) - 1)
    def _():
        o_ref[0, 0] = jnp.sum(acc_ref[...]) * jnp.float32(T * T / float(B))


# --------------------------------------------------------------------------- #
# Wrapper
# --------------------------------------------------------------------------- #
_VMEM_BUDGET_BYTES = 36 * 1024 * 1024    # per-core working set (under v7x's 64 MiB)
_VMEM_LIMIT_BYTES = 48 * 1024 * 1024     # scoped VMEM limit, safe on v5e/v6e/v7x
_NUM_F32_TILE_TEMPS = 8                  # live (TB, C) f32 intermediates (conservative)
_NUM_COL_TEMPS = 8                       # live (TB, 1) cols; lane-padded -> 512 B/row


def _choose_tile_b(B, C, itemsize):
    """Batch tile sized by bytes: 2 inputs x 2 pipeline buffers + f32 intermediates
    + lane-padded column temporaries must fit the per-core VMEM budget."""
    per_row = C * (4 * itemsize + 4 * _NUM_F32_TILE_TEMPS) + 512 * _NUM_COL_TEMPS
    align = max(8, 32 // max(1, itemsize))          # f32->8, bf16->16, int8/fp8->32
    tb = max(align, (_VMEM_BUDGET_BYTES // per_row) // align * align)
    if tb >= B:
        return B                                    # single tile: block == full batch
    return tb


def distill_kl(y_s, y_t, T, class_weights=None, *, tile_b=None):
    """Pallas implementation of DistillKL.forward. Returns a () float32 scalar."""
    B, C = y_s.shape
    itemsize = max(jnp.dtype(y_s.dtype).itemsize, jnp.dtype(y_t.dtype).itemsize)
    TB = tile_b if tile_b is not None else _choose_tile_b(B, C, itemsize)

    nt = pl.cdiv(B, TB)                 # real batch tiles
    NC = 2 if nt >= 2 else 1            # 2-way split (v7x megacore; serial elsewhere)
    ntpc = pl.cdiv(nt, NC)              # tiles per core
    grid = (NC, ntpc)
    need_mask = (NC * ntpc * TB) != B   # ragged last tile and/or phantom tile

    if NC * ntpc == nt:                 # no phantom tile -> no clamp needed
        def logits_map(c, i):
            return (c * ntpc + i, 0)
    else:                               # clamp phantom tile; its rows are masked out
        def logits_map(c, i):
            return (jnp.minimum(c * ntpc + i, nt - 1), 0)

    logits_spec = pl.BlockSpec((TB, C), logits_map)
    out_spec = pl.BlockSpec((1, 1), lambda c, i: (c, 0),
                            memory_space=pltpu.MemorySpace.SMEM)
    out_shape = jax.ShapeDtypeStruct((NC, 1), jnp.float32)
    scratch_shapes = [pltpu.VMEM((TB, 1), jnp.float32)]

    compiler_params = pltpu.CompilerParams(
        dimension_semantics=("parallel", "arbitrary"),
        vmem_limit_bytes=_VMEM_LIMIT_BYTES,
    )

    if class_weights is None:
        kern = functools.partial(_kd_kernel, T=float(T), B=B, TB=TB,
                                 need_mask=need_mask)
        partials = pl.pallas_call(
            kern,
            grid=grid,
            in_specs=[logits_spec, logits_spec],
            out_specs=out_spec,
            out_shape=out_shape,
            scratch_shapes=scratch_shapes,
            compiler_params=compiler_params,
        )(y_s, y_t)
    else:
        cw = class_weights.reshape(1, C)
        cw_spec = pl.BlockSpec((1, C), lambda c, i: (0, 0))   # resident across tiles
        kern = functools.partial(_kd_weighted_kernel, T=float(T), B=B, TB=TB,
                                 need_mask=need_mask)
        partials = pl.pallas_call(
            kern,
            grid=grid,
            in_specs=[logits_spec, logits_spec, cw_spec],
            out_specs=out_spec,
            out_shape=out_shape,
            scratch_shapes=scratch_shapes,
            compiler_params=compiler_params,
        )(y_s, y_t, cw)

    return jnp.sum(partials)            # sum per-core partials (already T^2/B scaled)


# --------------------------------------------------------------------------- #
# Reference & self-test
# --------------------------------------------------------------------------- #
def _reference(y_s, y_t, T, class_weights=None):
    """Pure-JAX reference mirroring the PyTorch module."""
    log_ps = jax.nn.log_softmax(y_s / T, axis=1)
    log_pt = jax.nn.log_softmax(y_t / T, axis=1)
    pt = jnp.exp(log_pt)
    kl = pt * (log_pt - log_ps)
    if class_weights is not None:
        preds = jnp.argmax(y_t, axis=1)
        w = class_weights[preds][:, None]
        return jnp.sum(kl * w) * T ** 2 / y_s.shape[0]
    return jnp.sum(kl) * T ** 2 / y_s.shape[0]


if __name__ == "__main__":
    T = 4.0
    key = jax.random.PRNGKey(0)
    k1, k2, k3, k4, k5, k6, k7, k8 = jax.random.split(key, 8)

    # --- small single-tile case (B=2, C=16), matching the module's typical use ---
    B, C = 2, 16
    y_s = jax.random.normal(k1, (B, C), dtype=jnp.float32)
    y_t = jax.random.normal(k2, (B, C), dtype=jnp.float32)
    class_weights = jax.random.uniform(k3, (C,), dtype=jnp.float32) + 0.5

    loss = distill_kl(y_s, y_t, T)
    jax.block_until_ready(loss)
    ref = _reference(y_s, y_t, T)
    assert jnp.allclose(loss, ref, rtol=5e-3, atol=5e-4), (loss, ref)

    loss_w = distill_kl(y_s, y_t, T, class_weights)
    jax.block_until_ready(loss_w)
    ref_w = _reference(y_s, y_t, T, class_weights)
    assert jnp.allclose(loss_w, ref_w, rtol=5e-3, atol=5e-4), (loss_w, ref_w)

    # --- multi-tile case: B=20, TB=8 -> 3 real tiles, 2-core split (grid (2,2)),
    #     one ragged tile and one clamped phantom tile, both masked ---
    B2, C2 = 20, 128
    y_s2 = jax.random.normal(k4, (B2, C2), dtype=jnp.float32)
    y_t2 = jax.random.normal(k5, (B2, C2), dtype=jnp.float32)
    cw2 = jax.random.uniform(k6, (C2,), dtype=jnp.float32) + 0.5

    loss2 = distill_kl(y_s2, y_t2, T, tile_b=8)
    jax.block_until_ready(loss2)
    ref2 = _reference(y_s2, y_t2, T)
    assert jnp.allclose(loss2, ref2, rtol=5e-3, atol=5e-4), (loss2, ref2)

    loss2_w = distill_kl(y_s2, y_t2, T, cw2, tile_b=8)
    jax.block_until_ready(loss2_w)
    ref2_w = _reference(y_s2, y_t2, T, cw2)
    assert jnp.allclose(loss2_w, ref2_w, rtol=5e-3, atol=5e-4), (loss2_w, ref2_w)

    # --- bf16 logits path: B=24, C=256, TB=16 -> grid (2,1), ragged last tile ---
    B3, C3 = 24, 256
    y_s3 = jax.random.normal(k7, (B3, C3), dtype=jnp.float32).astype(jnp.bfloat16)
    y_t3 = jax.random.normal(k8, (B3, C3), dtype=jnp.float32).astype(jnp.bfloat16)

    loss3 = distill_kl(y_s3, y_t3, T, tile_b=16)
    jax.block_until_ready(loss3)
    ref3 = _reference(y_s3.astype(jnp.float32), y_t3.astype(jnp.float32), T)
    assert jnp.allclose(loss3, ref3, rtol=5e-3, atol=5e-4), (loss3, ref3)

    print("KERNEL_OK")
</pallas_src>

<mosaic_0001>
module attributes {stable_mosaic.version = 11 : i64} {
  func.func @_kd_kernel(%arg0: i32, %arg1: i32, %arg2: memref<2x16xf32, #tpu.memory_space<vmem>>, %arg3: memref<2x16xf32, #tpu.memory_space<vmem>>, %arg4: memref<1x1xf32, #tpu.memory_space<smem>>, %arg5: memref<2x1xf32, #tpu.memory_space<vmem>>) attributes {dimension_semantics = [#tpu.dimension_semantics<parallel>, #tpu.dimension_semantics<arbitrary>], iteration_bounds = array<i64: 1, 1>, scalar_prefetch = 0 : i64, scratch_operands = 1 : i64, tpu.core_type = #tpu.core_type<tc>, window_params = [{transform_indices = @transform_0, window_bounds = array<i64: 2, 16>}, {transform_indices = @transform_1, window_bounds = array<i64: 2, 16>}, {transform_indices = @transform_2, window_bounds = array<i64: 1, 1>}]} {
    %c0_i32 = arith.constant 0 : i32
    %0 = arith.cmpi eq, %arg1, %c0_i32 : i32
    %1 = arith.extui %0 : i1 to i32
    %c0_i32_0 = arith.constant 0 : i32
    %2 = arith.cmpi ne, %1, %c0_i32_0 : i32
    scf.if %2 {
      %cst_16 = arith.constant 0.000000e+00 : f32
      %38 = vector.broadcast %cst_16 : f32 to vector<2x1xf32>
      %c0_17 = arith.constant 0 : index
      %c0_18 = arith.constant 0 : index
      %39 = vector.load %arg5[%c0_17, %c0_18] : memref<2x1xf32, #tpu.memory_space<vmem>>, vector<2x1xf32>
      tpu.vector_store %arg5[%c0_17, %c0_18], %38 {strides = array<i32>} : memref<2x1xf32, #tpu.memory_space<vmem>>, vector<2x1xf32>,
    } else {
    }
    %c0 = arith.constant 0 : index
    %c0_1 = arith.constant 0 : index
    %3 = vector.load %arg2[%c0, %c0_1] : memref<2x16xf32, #tpu.memory_space<vmem>>, vector<2x16xf32>
    %cst = arith.constant 2.500000e-01 : f32
    %4 = vector.broadcast %cst : f32 to vector<2x16xf32>
    %5 = arith.mulf %3, %4 : vector<2x16xf32>
    %c0_2 = arith.constant 0 : index
    %c0_3 = arith.constant 0 : index
    %6 = vector.load %arg3[%c0_2, %c0_3] : memref<2x16xf32, #tpu.memory_space<vmem>>, vector<2x16xf32>
    %cst_4 = arith.constant 2.500000e-01 : f32
    %7 = vector.broadcast %cst_4 : f32 to vector<2x16xf32>
    %8 = arith.mulf %6, %7 : vector<2x16xf32>
    %cst_5 = arith.constant dense<0xFF800000> : vector<2xf32>
    %9 = vector.multi_reduction <maximumf>, %5, %cst_5 [1] : vector<2x16xf32> to vector<2xf32>
    %10 = vector.shape_cast %9 : vector<2xf32> to vector<2x1xf32>
    %cst_6 = arith.constant dense<0xFF800000> : vector<2xf32>
    %11 = vector.multi_reduction <maximumf>, %8, %cst_6 [1] : vector<2x16xf32> to vector<2xf32>
    %12 = vector.shape_cast %11 : vector<2xf32> to vector<2x1xf32>
    %13 = vector.broadcast %10 : vector<2x1xf32> to vector<2x16xf32>
    %14 = arith.subf %5, %13 : vector<2x16xf32>
    %15 = vector.broadcast %12 : vector<2x1xf32> to vector<2x16xf32>
    %16 = arith.subf %8, %15 : vector<2x16xf32>
    %17 = math.exp %14 : vector<2x16xf32>
    %18 = math.exp %16 : vector<2x16xf32>
    %cst_7 = arith.constant dense<0.000000e+00> : vector<2xf32>
    %19 = vector.multi_reduction <add>, %17, %cst_7 [1] : vector<2x16xf32> to vector<2xf32>
    %20 = vector.shape_cast %19 : vector<2xf32> to vector<2x1xf32>
    %cst_8 = arith.constant dense<0.000000e+00> : vector<2xf32>
    %21 = vector.multi_reduction <add>, %18, %cst_8 [1] : vector<2x16xf32> to vector<2xf32>
    %22 = vector.shape_cast %21 : vector<2xf32> to vector<2x1xf32>
    %23 = arith.subf %16, %14 : vector<2x16xf32>
    %24 = arith.mulf %18, %23 : vector<2x16xf32>
    %cst_9 = arith.constant dense<0.000000e+00> : vector<2xf32>
    %25 = vector.multi_reduction <add>, %24, %cst_9 [1] : vector<2x16xf32> to vector<2xf32>
    %26 = vector.shape_cast %25 : vector<2xf32> to vector<2x1xf32>
    %27 = arith.divf %26, %22 : vector<2x1xf32>
    %28 = math.log %20 : vector<2x1xf32>
    %29 = math.log %22 : vector<2x1xf32>
    %30 = arith.subf %28, %29 : vector<2x1xf32>
    %31 = arith.addf %27, %30 : vector<2x1xf32>
    %c0_10 = arith.constant 0 : index
    %c0_11 = arith.constant 0 : index
    %32 = vector.load %arg5[%c0_10, %c0_11] : memref<2x1xf32, #tpu.memory_space<vmem>>, vector<2x1xf32>
    %33 = arith.addf %32, %31 : vector<2x1xf32>
    %c0_12 = arith.constant 0 : index
    %c0_13 = arith.constant 0 : index
    %34 = vector.load %arg5[%c0_12, %c0_13] : memref<2x1xf32, #tpu.memory_space<vmem>>, vector<2x1xf32>
    tpu.vector_store %arg5[%c0_12, %c0_13], %33 {strides = array<i32>} : memref<2x1xf32, #tpu.memory_space<vmem>>, vector<2x1xf32>,
    %c0_i32_14 = arith.constant 0 : i32
    %35 = arith.cmpi eq, %arg1, %c0_i32_14 : i32
    %36 = arith.extui %35 : i1 to i32
    %c0_i32_15 = arith.constant 0 : i32
    %37 = arith.cmpi ne, %36, %c0_i32_15 : i32
    scf.if %37 {
      %c0_16 = arith.constant 0 : index
      %c0_17 = arith.constant 0 : index
      %38 = vector.load %arg5[%c0_16, %c0_17] : memref<2x1xf32, #tpu.memory_space<vmem>>, vector<2x1xf32>
      %39 = vector.shape_cast %38 : vector<2x1xf32> to vector<1x2x1xf32>
      %cst_18 = arith.constant dense<0.000000e+00> : vector<1xf32>
      %40 = vector.multi_reduction <add>, %39, %cst_18 [1, 2] : vector<1x2x1xf32> to vector<1xf32>
      %41 = vector.shape_cast %40 : vector<1xf32> to vector<1x1x1xf32>
      %42 = vector.extract %41[0, 0, 0] : f32 from vector<1x1x1xf32>
      %cst_19 = arith.constant 8.000000e+00 : f32
      %43 = arith.mulf %42, %cst_19 : f32
      %c0_20 = arith.constant 0 : index
      %c0_21 = arith.constant 0 : index
      %44 = memref.load %arg4[%c0_20, %c0_21] : memref<1x1xf32, #tpu.memory_space<smem>>
      memref.store %43, %arg4[%c0_20, %c0_21] : memref<1x1xf32, #tpu.memory_space<smem>>
    } else {
    }
    return
  }
  func.func @transform_0(%arg0: i32, %arg1: i32) -> (i32, i32) {
    %c1_i32 = arith.constant 1 : i32
    %0 = arith.muli %arg0, %c1_i32 : i32
    %1 = arith.addi %0, %arg1 : i32
    %c0_i32 = arith.constant 0 : i32
    %c0_i32_0 = arith.constant 0 : i32
    return %1, %c0_i32 : i32, i32
  }
  func.func @transform_1(%arg0: i32, %arg1: i32) -> (i32, i32) {
    %c1_i32 = arith.constant 1 : i32
    %0 = arith.muli %arg0, %c1_i32 : i32
    %1 = arith.addi %0, %arg1 : i32
    %c0_i32 = arith.constant 0 : i32
    %c0_i32_0 = arith.constant 0 : i32
    return %1, %c0_i32 : i32, i32
  }
  func.func @transform_2(%arg0: i32, %arg1: i32) -> (i32, i32) {
    %c0_i32 = arith.constant 0 : i32
    %c0_i32_0 = arith.constant 0 : i32
    return %arg0, %c0_i32 : i32, i32
  }
}

</mosaic_0001>

<bundles_post_ra>
// kernel: tpu_custom_call.1
= control target key start
LH: loop header
LB: loop body
LE: loop exit
PB: predicated region body
PF: predicated region fallthrough
CT: control target
= control target key end

     0   :  { %7 = vsyncpa [#allocation4], 0  ;;  %s259_s0 = inlined_call_operand.hbm [shape: f32[2,16], index: 0, kind: input, shape index: {}]   ;;  %s260_s1 = inlined_call_operand.hbm [shape: f32[2,16], index: 1, kind: input, shape index: {}]   ;;  %s261_s2 = inlined_call_operand.hbm [shape: f32[1,1], index: 2, kind: output, shape index: {}]  }
   0x1   :  { %8 = vsyncpa [#allocation7], 0 }
   0x2   :  { %9 = vsyncpa [#allocation5], 0  ;;  %s18_s11 = sshll.u32 %s259_s0, 4  ;;  %s223_s12 = smov [#allocation3]   ;;  %s19_s11 = int_to_ptr.hbm [resolvable:$true] %s18_s11 }
   0x3   :  { %s20_s13 = sshll.u32 %s223_s12, 4  ;;  %s32_s16 = sshll.u32 %s260_s1, 4  ;;  %s21_s13 = int_to_ptr.vmem [resolvable:$true] %s20_s13  ;;  %s33_s16 = int_to_ptr.hbm [resolvable:$true] %s32_s16 }
   0x4   :  { %23 = dma.hbm_to_vmem [thread:$0]  %s19_s11, 32, %s21_s13, [#allocation4]  }
   0x5   :  { %s224_s17 = smov [#allocation6]  }
   0x6   :  { %s34_s18 = sshll.u32 %s224_s17, 4  ;;  %s35_s18 = int_to_ptr.vmem [resolvable:$true] %s34_s18 }
   0x7   :  { %37 = dma.hbm_to_vmem [thread:$0]  %s33_s16, 32, %s35_s18, [#allocation7]  }
   0x8   :  { %217 = dma.done.wait [#allocation4], 32  }
   0x9   :  { %218 = vsyncadd [#allocation4], 4294967264 }
   0xa   :  { %219 = dma.done.wait [#allocation7], 32  }
   0xb   :  { %220 = vsyncadd [#allocation7], 4294967264  ;;  %v56_v0 = vld [vmem:[#allocation6] sm:$0x3]  ;;  %vm58_vm0 = vcmask 123904   ;;  %vm52_vm1 = vcmask 1024  }
   0xc   :  { %v57_v1 = vmul.f32 0.25, %v56_v0  ;;  %v54_v2 = vld [vmem:[#allocation3] sm:$0x3]  ;;  %v225_v19 = vmov 0.0   ;;  %s129_s19 = sshll.u32 %s261_s2, 4  ;;  %s226_s22 = smov [#allocation8]   ;;  %s130_s19 = int_to_ptr.hbm [resolvable:$true] %s129_s19 }
   0xd   :  { %v55_v4 = vmul.f32 0.25, %v54_v2  ;;  %53 = vst.msk [vmem:[#allocation2] sm:$0x3] %vm52_vm1, %v225_v19 }
   0xe   :  { %v62_v3 = vsel %vm58_vm0, %v57_v1, -inf }
   0xf   :  { %63 = vmax.xlane.f32.xlu0 %v62_v3  ;;  %v59_v5 = vsel %vm58_vm0, %v55_v4, -inf }
  0x14   :  { %v103_v39 = vld [vmem:[#allocation2] sm:$0x3] }
  0x17   :  { %60 = vmax.xlane.f32.xlu0 %v59_v5 }
  0x82   :  { %v64_v6 = vpop.xlane.xlu0 %63 }
  0x83   :  { %v66_v7 = vsub.f32 %v57_v1, %v64_v6 }
  0x85   :  { %v69_v8 = vmul.f32 1.442695, %v66_v7 }
  0x87   :  { %147 = vpow2.f32 %v69_v8 }
  0x8a   :  { %v61_v9 = vpop.xlane.xlu0 %60 }
  0x8b   :  { %v65_v10 = vsub.f32 %v55_v4, %v61_v9 }
  0x8d   :  { %v148_v11 = vpop.eup %147  ;;  %v67_v12 = vmul.f32 1.442695, %v65_v10  ;;  %v77_v13 = vsub.f32 %v66_v7, %v65_v10 }
  0x8e   :  { %v74_v14 = vsel %vm58_vm0, %v148_v11, 0.0 }
  0x8f   :  { %149 = vpow2.f32 %v67_v12  ;;  %75 = vadd.xlane.f32.xlu1 %v74_v14  ;;  %v78_v15 = vmul.f32 %v148_v11, %v77_v13 }
  0x91   :  { %v79_v16 = vsel %vm58_vm0, %v78_v15, 0.0 }
  0x92   :  { %80 = vadd.xlane.f32.xlu2 %v79_v16 }
  0x95   :  { %v150_v17 = vpop.eup %149 }
  0x96   :  { %v71_v18 = vsel %vm58_vm0, %v150_v17, 0.0 }
  0x97   :  { %72 = vadd.xlane.f32.xlu1 %v71_v18 }
 0x102   :  { %v76_v20 = vpop.xlane.xlu1 %75 }
 0x103   :  { %151 = vrcp.f32 %v76_v20  ;;  %v93_v25 = vand.u32 2147483648, %v76_v20  ;;  %v91_v27 = vand.u32 2147483647, %v76_v20  ;;  %vm87_vm3 = vweird.f32 %v76_v20 }
 0x104   :  { %153 = vlog2.f32 %v76_v20 }
 0x105   :  { %v94_v31 = vor.u32 1.1754944e-38, %v93_v25  ;;  %vm92_vm5 = vcmp.eq.f32.partialorder %v91_v27, 8.507059e+37  ;;  %v81_v36 = vpop.xlane.xlu2 %80 }
 0x109   :  { %v152_v21 = vpop.eup %151 }
 0x10a   :  { %v83_v22 = vmul.f32 %v152_v21, %v76_v20  ;;  %v73_v23 = vpop.xlane.xlu1 %72  ;;  %vm88_vm2 = vweird.f32 %v152_v21  ;;  %v154_v28 = vpop.eup %153 }
 0x10b   :  { %155 = vlog2.f32 %v73_v23  ;;  %vm89_vm4 = vmor %vm87_vm3, %vm88_vm2  ;;  %v100_v33 = vmul.f32 0.6931472, %v154_v28 }
 0x10c   :  { %v84_v24 = vsub.f32 1.0, %v83_v22 }
 0x10e   :  { %v85_v26 = vmul.f32 %v152_v21, %v84_v24 }
 0x110   :  { %v86_v29 = vadd.f32 %v152_v21, %v85_v26 }
 0x111   :  { %v156_v30 = vpop.eup %155 }
 0x112   :  { %v90_v32 = vsel %vm89_vm4, %v152_v21, %v86_v29  ;;  %v98_v34 = vmul.f32 0.6931472, %v156_v30 }
 0x113   :  { %v95_v35 = vsel %vm92_vm5, %v94_v31, %v90_v32 }
 0x114   :  { %v96_v37 = vmul.f32 %v95_v35, %v81_v36  ;;  %v101_v38 = vsub.f32 %v98_v34, %v100_v33 }
 0x116   :  { %v102_v40 = vadd.f32 %v101_v38, %v96_v37 }
 0x118   :  { %v104_v41 = vadd.f32 %v103_v39, %v102_v40 }
 0x11a   :  { %106 = vst.msk [vmem:[#allocation2] sm:$0x3] %vm52_vm1, %v104_v41 }
 0x121   :  { %v110_v42 = vld [vmem:[#allocation2] sm:$0x3] }
 0x122   :  { %v111_v43 = vsel %vm52_vm1, %v110_v42, 0.0 }
 0x123   :  { %112 = vadd.xlane.f32.xlu2 %v111_v43 }
 0x196   :  { %v113_v44 = vpop.xlane.xlu2 %112 }
 0x197   :  { %v114_v45 = vrot.slane %v113_v44, 4 }
 0x199   :  { %v115_v46 = vadd.f32 %v114_v45, %v113_v44 }
 0x19b   :  { %v116_v47 = vrot.slane %v115_v46, 2 }
 0x19d   :  { %v117_v48 = vadd.f32 %v116_v47, %v115_v46 }
 0x19f   :  { %v118_v49 = vrot.slane %v117_v48, 1 }
 0x1a1   :  { %v119_v50 = vadd.f32 %v118_v49, %v117_v48 }
 0x1a3   :  { %141 = vpush %v119_v50 }
 0x1d4   :  { %s142_s20 = spop %141 }
 0x1d5   :  { %s121_s21 = smul.f32 8.0, %s142_s20 }
 0x1d7   :  { %123 = sst [smem:[#allocation8]] %s121_s21 }
 0x1d8   :  { %132 = dma.smem_to_hbm %s226_s22, 16, %s130_s19, [#allocation5]  }
 0x1d9   :  { %221 = dma.done.wait [#allocation5], 16  }
 0x1da   :  { %222 = vsyncadd [#allocation5], 4294967280 }
 0x1db   :  { %137 = sfence }
 0x1dc   :  { %138 = vsyncpa [#allocation4], 1 }
 0x1dd   :  { %139 = vsyncpa [#allocation7], 1 }
 0x1de   :  { %140 = vsyncpa [#allocation5], 1 }

</bundles_post_ra>
